<compile_context>
chip_gen: v6e
topology: v6e:2x2x1
jax: 0.10.0
libtpu: 0.0.40
codegen_flags: <defaults>
</compile_context>

<pallas_src>
import functools

import jax
import jax.numpy as jnp
from jax.experimental import pallas as pl
from jax.experimental.pallas import tpu as pltpu


def _one_dim_cnn_fused_kernel(x_ref, w_ref, b_ref, m_ref, o_ref, *,
                              lout_pad, h_max, compute_dtype):
    """Fused conv(all branches) -> mask -> global max-pool -> bias -> ReLU for one batch tile.

    x_ref: (tb, Lp, C)        f32  zero-padded input tile, Lp = lout_pad + h_max - 1
    w_ref: (h_max*C, NFp)     bf16 K-padded, branch-concatenated, N-padded conv weights
    b_ref: (1, NFp)           f32  concatenated (N-padded) biases
    m_ref: (lout_pad, NFp)    f32  0 where the window is valid for that branch, -1e30 otherwise
    o_ref: (tb, NFp)          f32
    """
    tb, _, c = x_ref.shape
    nfp = w_ref.shape[-1]

    # Cast the input ONCE (im2col replicates every element up to h_max times, so
    # casting the shifted views / cols instead would do ~h_max x the cast work).
    x = x_ref[...].astype(compute_dtype)                                     # (tb, Lp, C)

    # Shared im2col for every branch: lane-concat of h_max shifted views, K = h_max*C.
    cols = jnp.concatenate([x[:, k:k + lout_pad, :] for k in range(h_max)], axis=-1)
    cols = cols.reshape(tb * lout_pad, h_max * c)      # sublane-aligned merge (lout_pad % 8 == 0)

    # ONE MXU call for both conv branches and all batch rows; f32 accumulation.
    acc = jnp.dot(cols, w_ref[...], preferred_element_type=jnp.float32)      # (tb*lout_pad, NFp)

    # Mask invalid window positions per branch, then global max-pool over positions.
    acc = acc.reshape(tb, lout_pad, nfp) + m_ref[...]
    pooled = jnp.max(acc, axis=1)                                            # (tb, NFp)

    # bias + ReLU folded after the pool (algebraically identical to pre-pool bias+ReLU).
    o_ref[...] = jnp.maximum(pooled + b_ref[...], 0.0)


def one_dim_cnn_forward(x, params, kernel_sizes, *, compute_dtype=jnp.bfloat16,
                        batch_tile=None):
    """OneDimCNN forward.  x: (B, L, C) f32; params[i] = (w (h, C, F), b (F,))."""
    B, L, C = x.shape
    F = params[0][1].shape[0]
    n = len(kernel_sizes)
    h_max = max(kernel_sizes)
    h_min = min(kernel_sizes)
    NF = n * F
    NFp = ((NF + 127) // 128) * 128             # lane-dense weight-N / output width
    K = h_max * C                               # shared im2col contraction length

    lout = L - h_min + 1                        # most windows any branch produces
    lout_pad = ((lout + 7) // 8) * 8            # sublane-aligned window count
    Lp = lout_pad + h_max - 1                   # padded sequence length

    # Zero-pad x along L so every h_max-wide window of the shared im2col is in bounds.
    x_pad = jnp.pad(x, ((0, 0), (0, Lp - L), (0, 0)))

    # Combined weight (K, NFp), bias (1, NFp) and per-branch window-validity mask.
    w_blocks, b_blocks, m_blocks = [], [], []
    win = jnp.arange(lout_pad)[:, None]
    for h, (w, bias) in zip(kernel_sizes, params):
        wk = w.reshape(h * C, F)                                 # row index = tap*C + channel
        w_blocks.append(jnp.pad(wk, ((0, K - h * C), (0, 0))))   # zero-pad K to h_max*C
        b_blocks.append(bias)
        valid = win < (L - h + 1)                                # this branch's real windows
        m_blocks.append(jnp.broadcast_to(jnp.where(valid, 0.0, -1e30), (lout_pad, F)))
    w_comb = jnp.pad(jnp.concatenate(w_blocks, axis=1),
                     ((0, 0), (0, NFp - NF))).astype(compute_dtype)          # (K, NFp) bf16
    b_comb = jnp.pad(jnp.concatenate(b_blocks),
                     (0, NFp - NF)).reshape(1, NFp).astype(jnp.float32)      # (1, NFp) f32
    mask = jnp.pad(jnp.concatenate(m_blocks, axis=1),
                   ((0, 0), (0, NFp - NF))).astype(jnp.float32)              # (lout_pad, NFp)

    if batch_tile is None:
        batch_tile = B if B <= 128 else 128
    assert B % batch_tile == 0, "B must be divisible by batch_tile"
    assert batch_tile == B or batch_tile % 8 == 0, "partial batch tiles must be 8-aligned"
    grid = (B // batch_tile,)

    kernel = functools.partial(
        _one_dim_cnn_fused_kernel,
        lout_pad=lout_pad, h_max=h_max, compute_dtype=compute_dtype)

    out = pl.pallas_call(
        kernel,
        out_shape=jax.ShapeDtypeStruct((B, NFp), jnp.float32),
        grid=grid,
        in_specs=[
            pl.BlockSpec((batch_tile, Lp, C), lambda i: (i, 0, 0)),   # batch-tiled input
            pl.BlockSpec((K, NFp), lambda i: (0, 0)),                 # resident weight
            pl.BlockSpec((1, NFp), lambda i: (0, 0)),                 # resident bias
            pl.BlockSpec((lout_pad, NFp), lambda i: (0, 0)),          # resident mask
        ],
        out_specs=pl.BlockSpec((batch_tile, NFp), lambda i: (i, 0)),
        compiler_params=pltpu.CompilerParams(
            dimension_semantics=("parallel",)),    # 2x on v7x megacore at realistic B
    )(x_pad, w_comb, b_comb, mask)

    # Drop the lane padding.  Dropout(p=0.1) is identity in eval mode.
    return out[:, :NF]


def _reference_forward(x, params, kernel_sizes):
    """Pure-JAX f32 reference mirroring the PyTorch module, for verification."""
    outs = []
    for h, (w, bias) in zip(kernel_sizes, params):
        Lout = x.shape[1] - h + 1
        acc = jnp.zeros((x.shape[0], Lout, w.shape[-1]), jnp.float32)
        for k in range(h):
            acc = acc + jnp.einsum("blc,cf->blf", x[:, k:k + Lout, :], w[k])
        acc = jnp.maximum(acc + bias[None, None, :], 0.0)
        outs.append(jnp.max(acc, axis=1))
    return jnp.concatenate(outs, axis=1)


if __name__ == "__main__":
    # Small, module-consistent shapes.
    B = 2              # batch
    max_byte_len = 16  # sequence length L
    d_dim = 32         # input channels C
    filters = 32       # conv output channels F
    kernel_sizes = [3, 4]

    key = jax.random.PRNGKey(0)
    kx, *kps = jax.random.split(key, 1 + 2 * len(kernel_sizes))

    # Input in (B, L, C) -- PyTorch feeds (B, max_byte_len, d_dim) and transposes inside.
    x = jax.random.normal(kx, (B, max_byte_len, d_dim), dtype=jnp.float32)

    # Deterministic parameter init (torch Conv1d weight shape: (F, C, h), bias: (F,)).
    params = []
    for i, h in enumerate(kernel_sizes):
        kw, kb = kps[2 * i], kps[2 * i + 1]
        fan_in = d_dim * h
        bound = 1.0 / jnp.sqrt(jnp.float32(fan_in))
        w_torch = jax.random.uniform(
            kw, (filters, d_dim, h), minval=-bound, maxval=bound, dtype=jnp.float32
        )
        b = jax.random.uniform(
            kb, (filters,), minval=-bound, maxval=bound, dtype=jnp.float32
        )
        w = jnp.transpose(w_torch, (2, 1, 0))  # (h, C, F)
        params.append((w, b))

    out = one_dim_cnn_forward(x, params, kernel_sizes)
    out = jax.block_until_ready(out)

    ref = _reference_forward(x, params, kernel_sizes)
    assert out.shape == (B, len(kernel_sizes) * filters), out.shape
    # bf16 MXU operands (f32 accumulation) => compare with bf16-level tolerance.
    assert jnp.allclose(out, ref, atol=2e-2, rtol=2e-2), "mismatch vs JAX reference"

    print("KERNEL_OK")
</pallas_src>

<mosaic_0001>
module attributes {stable_mosaic.version = 11 : i64} {
  func.func @_one_dim_cnn_fused_kernel(%arg0: i32, %arg1: memref<2x19x32xf32, #tpu.memory_space<vmem>>, %arg2: memref<128x128xbf16, #tpu.memory_space<vmem>>, %arg3: memref<1x128xf32, #tpu.memory_space<vmem>>, %arg4: memref<16x128xf32, #tpu.memory_space<vmem>>, %arg5: memref<2x128xf32, #tpu.memory_space<vmem>>) attributes {dimension_semantics = [#tpu.dimension_semantics<parallel>], iteration_bounds = array<i64: 1>, scalar_prefetch = 0 : i64, scratch_operands = 0 : i64, tpu.core_type = #tpu.core_type<tc>, window_params = [{transform_indices = @transform_0, window_bounds = array<i64: 2, 19, 32>}, {pipeline_mode = #tpu.pipeline_mode<synchronous>, transform_indices = @transform_1, window_bounds = array<i64: 128, 128>}, {pipeline_mode = #tpu.pipeline_mode<synchronous>, transform_indices = @transform_2, window_bounds = array<i64: 1, 128>}, {pipeline_mode = #tpu.pipeline_mode<synchronous>, transform_indices = @transform_3, window_bounds = array<i64: 16, 128>}, {transform_indices = @transform_4, window_bounds = array<i64: 2, 128>}]} {
    %c0 = arith.constant 0 : index
    %c0_0 = arith.constant 0 : index
    %c0_1 = arith.constant 0 : index
    %0 = vector.load %arg1[%c0, %c0_0, %c0_1] : memref<2x19x32xf32, #tpu.memory_space<vmem>>, vector<2x19x32xf32>
    %1 = arith.truncf %0 : vector<2x19x32xf32> to vector<2x19x32xbf16>
    %2 = vector.extract_strided_slice %1 {offsets = [0, 0, 0], sizes = [2, 16, 32], strides = [1, 1, 1]} : vector<2x19x32xbf16> to vector<2x16x32xbf16>
    %3 = vector.extract_strided_slice %1 {offsets = [0, 1, 0], sizes = [2, 16, 32], strides = [1, 1, 1]} : vector<2x19x32xbf16> to vector<2x16x32xbf16>
    %4 = vector.extract_strided_slice %1 {offsets = [0, 2, 0], sizes = [2, 16, 32], strides = [1, 1, 1]} : vector<2x19x32xbf16> to vector<2x16x32xbf16>
    %5 = vector.extract_strided_slice %1 {offsets = [0, 3, 0], sizes = [2, 16, 32], strides = [1, 1, 1]} : vector<2x19x32xbf16> to vector<2x16x32xbf16>
    %6 = tpu.concatenate %2, %3, %4, %5 in 2 : vector<2x16x32xbf16>, vector<2x16x32xbf16>, vector<2x16x32xbf16>, vector<2x16x32xbf16> -> vector<2x16x128xbf16>
    %7 = vector.shape_cast %6 : vector<2x16x128xbf16> to vector<32x128xbf16>
    %c0_2 = arith.constant 0 : index
    %c0_3 = arith.constant 0 : index
    %8 = vector.load %arg2[%c0_2, %c0_3] : memref<128x128xbf16, #tpu.memory_space<vmem>>, vector<128x128xbf16>
    %cst = arith.constant dense<0.000000e+00> : vector<32x128xf32>
    %9 = tpu.matmul %7, %8, %cst {dimension_numbers = #tpu.dot_dimension_numbers<[1], [0], [0], [1], [0, 0, 1, 1], [], []>} : vector<32x128xbf16>, vector<128x128xbf16>, vector<32x128xf32> -> vector<32x128xf32>
    %10 = vector.shape_cast %9 : vector<32x128xf32> to vector<2x16x128xf32>
    %c0_4 = arith.constant 0 : index
    %c0_5 = arith.constant 0 : index
    %11 = vector.load %arg4[%c0_4, %c0_5] : memref<16x128xf32, #tpu.memory_space<vmem>>, vector<16x128xf32>
    %12 = vector.shape_cast %11 : vector<16x128xf32> to vector<1x16x128xf32>
    %13 = vector.broadcast %12 : vector<1x16x128xf32> to vector<2x16x128xf32>
    %14 = arith.addf %10, %13 : vector<2x16x128xf32>
    %cst_6 = arith.constant dense<0xFF800000> : vector<2x128xf32>
    %15 = vector.multi_reduction <maximumf>, %14, %cst_6 [1] : vector<2x16x128xf32> to vector<2x128xf32>
    %c0_7 = arith.constant 0 : index
    %c0_8 = arith.constant 0 : index
    %16 = vector.load %arg3[%c0_7, %c0_8] : memref<1x128xf32, #tpu.memory_space<vmem>>, vector<1x128xf32>
    %17 = vector.broadcast %16 : vector<1x128xf32> to vector<2x128xf32>
    %18 = arith.addf %15, %17 : vector<2x128xf32>
    %cst_9 = arith.constant 0.000000e+00 : f32
    %19 = vector.broadcast %cst_9 : f32 to vector<2x128xf32>
    %20 = arith.maximumf %18, %19 : vector<2x128xf32>
    %c0_10 = arith.constant 0 : index
    %c0_11 = arith.constant 0 : index
    %21 = vector.load %arg5[%c0_10, %c0_11] : memref<2x128xf32, #tpu.memory_space<vmem>>, vector<2x128xf32>
    tpu.vector_store %arg5[%c0_10, %c0_11], %20 {strides = array<i32>} : memref<2x128xf32, #tpu.memory_space<vmem>>, vector<2x128xf32>,
    return
  }
  func.func @transform_0(%arg0: i32) -> (i32, i32, i32) {
    %c0_i32 = arith.constant 0 : i32
    %c0_i32_0 = arith.constant 0 : i32
    %c0_i32_1 = arith.constant 0 : i32
    return %arg0, %c0_i32, %c0_i32_0 : i32, i32, i32
  }
  func.func @transform_1(%arg0: i32) -> (i32, i32) {
    %c0_i32 = arith.constant 0 : i32
    %c0_i32_0 = arith.constant 0 : i32
    %c0_i32_1 = arith.constant 0 : i32
    return %c0_i32, %c0_i32_0 : i32, i32
  }
  func.func @transform_2(%arg0: i32) -> (i32, i32) {
    %c0_i32 = arith.constant 0 : i32
    %c0_i32_0 = arith.constant 0 : i32
    %c0_i32_1 = arith.constant 0 : i32
    return %c0_i32, %c0_i32_0 : i32, i32
  }
  func.func @transform_3(%arg0: i32) -> (i32, i32) {
    %c0_i32 = arith.constant 0 : i32
    %c0_i32_0 = arith.constant 0 : i32
    %c0_i32_1 = arith.constant 0 : i32
    return %c0_i32, %c0_i32_0 : i32, i32
  }
  func.func @transform_4(%arg0: i32) -> (i32, i32) {
    %c0_i32 = arith.constant 0 : i32
    %c0_i32_0 = arith.constant 0 : i32
    return %arg0, %c0_i32 : i32, i32
  }
}

</mosaic_0001>

<bundles_post_ra>
// kernel: tpu_custom_call.1
= control target key start
LH: loop header
LB: loop body
LE: loop exit
PB: predicated region body
PF: predicated region fallthrough
CT: control target
= control target key end

     0   :  { %vm62_vm0 = vcmask 1046528   ;;  %vm29_vm1 = vsmask.f32 7424  ;;  %vm73_vm2 = vsmask.f32 6400  ;;  %s351_s30 = smov 64   ;;  %s452_s0 = inlined_call_operand.vmem [shape: f32[2,19,32], index: 0, kind: input, shape index: {}]   ;;  %s453_s1 = inlined_call_operand.vmem [shape: bf16[128,128], index: 1, kind: input, shape index: {}]   ;;  %s454_s2 = inlined_call_operand.vmem [shape: f32[1,128], index: 2, kind: input, shape index: {}]   ;;  %s455_s3 = inlined_call_operand.vmem [shape: f32[16,128], index: 3, kind: input, shape index: {}]   ;;  %s456_s4 = inlined_call_operand.hbm [shape: f32[2,128], index: 4, kind: output, shape index: {}]  }
   0x1   :  { %v19_v0 = vld [vmem:[%s452_s0] sm:$0xff]  ;;  %v20_v1 = vld [vmem:[%s452_s0 + $0x8] sm:$0xff]  ;;  %v21_v2 = vld [vmem:[%s452_s0 + $0x10] sm:$0x7]  ;;  %s352_s7 = smov 32   ;;  %s353_s10 = smov 96  }
   0x2   :  { %v389_v3 = vpack.c.bf16 %v20_v1, %v19_v0  ;;  %v26_v4 = vpack.c.bf16 %v21_v2, %v21_v2  ;;  %v22_v5 = vld [vmem:[%s452_s0 + $0x18] sm:$0xff]  ;;  %v23_v6 = vld [vmem:[%s452_s0 + $0x20] sm:$0xff]  ;;  %v24_v7 = vld [vmem:[%s452_s0 + $0x28] sm:$0x7] }
   0x3   :  { %v400_v8 = vpack.c.bf16 %v23_v6, %v22_v5  ;;  %v28_v14 = vpack.c.bf16 %v24_v7, %v24_v7  ;;  %v321_v17 = vld [vmem:[%s453_s1 + $0x38] sm:$0xff]   ;;  %v322_v22 = vld [vmem:[%s453_s1 + $0x30] sm:$0xff]   ;;  %v323_v35 = vld [vmem:[%s453_s1 + $0x28] sm:$0xff]  }
   0x4   :  { %v63_v9 = vrot.slane %v389_v3, 1  ;;  %v64_v10 = vrot.slane %v26_v4, 1  ;;  %v31_v11 = vshrl.u32 %v389_v3, 16  ;;  %v33_v12 = vshll.u32 %v389_v3, 16  ;;  %297 = vmatprep.subr.bf16.mxu0 %v321_v17  ;;  %v324_v46 = vld [vmem:[%s453_s1 + $0x20] sm:$0xff]  }
   0x5   :  { %v38_v13 = vshll.u32 %v26_v4, 16  ;;  %v66_v15 = vrot.slane %v400_v8, 1  ;;  %v43_v16 = vshrl.u32 %v400_v8, 16  ;;  %v45_v20 = vshll.u32 %v400_v8, 16  ;;  %298 = vmatpush3.bf16.msra.mxu0 %v321_v17 }
   0x6   :  { %v65_v18 = vsel %vm62_vm0, %v63_v9, %v64_v10  ;;  %v35_v19 = vrot.slane %v33_v12, 1  ;;  %v74_v21 = vrot.slane %v31_v11, 1  ;;  %v67_v24 = vrot.slane %v28_v14, 1  ;;  %299 = vmatprep.subr.bf16.mxu0 %v322_v22 }
   0x7   :  { %69 = vrot.lane.b32.xlu1 %v65_v18, %s351_s30  ;;  %v40_v23 = vrot.slane %v38_v13, 1  ;;  %v50_v25 = vshll.u32 %v28_v14, 16  ;;  %v83_v26 = vrot.slane %v43_v16, 1  ;;  %v47_v28 = vrot.slane %v45_v20, 1 }
   0x8   :  { %v36_v27 = vor.u32 %v35_v19, %v31_v11  ;;  %v84_v29 = vrot.slane %v45_v20, 2  ;;  %v86_v30 = vshrl.u32 %v28_v14, 16  ;;  %v68_v31 = vsel %vm62_vm0, %v66_v15, %v67_v24 }
   0x9   :  { %v52_v32 = vrot.slane %v50_v25, 1  ;;  %v89_v33 = vrot.slane %v50_v25, 2  ;;  %v75_v34 = vrot.slane %v33_v12, 2  ;;  %v48_v37 = vor.u32 %v47_v28, %v43_v16  ;;  %300 = vmatpush3.bf16.msra.mxu0 %v322_v22 }
   0xa   :  { %v41_v36 = vsel %vm29_vm1, %v36_v27, %v40_v23  ;;  %v85_v38 = vor.u32 %v84_v29, %v83_v26  ;;  %v88_v39 = vrot.slane %v86_v30, 1  ;;  %v77_v40 = vshrl.u32 %v26_v4, 16  ;;  %301 = vmatprep.subr.bf16.mxu0 %v323_v35 }
   0xb   :  { %54 = vrot.lane.b32.xlu0 %v41_v36, %s352_s7  ;;  %71 = vrot.lane.b32.xlu1 %v68_v31, %s351_s30  ;;  %v80_v41 = vrot.slane %v38_v13, 2  ;;  %v53_v42 = vsel %vm29_vm1, %v48_v37, %v52_v32  ;;  %v76_v44 = vor.u32 %v75_v34, %v74_v21 }
   0xc   :  { %v90_v43 = vor.u32 %v89_v33, %v88_v39  ;;  %v79_v45 = vrot.slane %v77_v40, 1 }
   0xe   :  { %v91_v47 = vsel %vm73_vm2, %v85_v38, %v90_v43  ;;  %v81_v48 = vor.u32 %v80_v41, %v79_v45 }
   0xf   :  { %56 = vrot.lane.b32.xlu0 %v53_v42, %s352_s7  ;;  %94 = vrot.lane.b32.xlu1 %v91_v47, %s353_s10 }
  0x10   :  { %9 = vsyncpa [#allocation3], 0  ;;  %302 = vmatpush3.bf16.msra.mxu0 %v323_v35  ;;  %v82_v49 = vsel %vm73_vm2, %v76_v44, %v81_v48  ;;  %v325_v50 = vld [vmem:[%s453_s1 + $0x18] sm:$0xff]   ;;  %v326_v51 = vld [vmem:[%s453_s1 + $0x10] sm:$0xff]   ;;  %vm96_vm3 = vcmask 261120   ;;  %vm101_vm4 = vcmask 523264  }
  0x11   :  { %303 = vmatprep.subr.bf16.mxu0 %v324_v46  ;;  %v327_v52 = vld [vmem:[%s453_s1 + $0x8] sm:$0xff]   ;;  %v328_v53 = vld [vmem:[%s453_s1] sm:$0xff]   ;;  %vm106_vm5 = vcmask 785408   ;;  %vm260_vm6 = vcmask 1041409  }
  0x12   :  { %v226_v4 = vld [vmem:[%s455_s3] sm:$0xff] }
  0x13   :  { %92 = vrot.lane.b32.xlu0 %v82_v49, %s353_s10  ;;  %v286_v23 = vld [vmem:[%s454_s2] ss:$0 sm:$0xff] }
  0x14   :  { %304 = vmatpush3.bf16.msra.mxu0 %v324_v46 }
  0x15   :  { %305 = vmatprep.subr.bf16.mxu0 %v325_v50 }
  0x18   :  { %306 = vmatpush3.bf16.msra.mxu0 %v325_v50 }
  0x19   :  { %307 = vmatprep.subr.bf16.mxu0 %v326_v51 }
  0x1c   :  { %308 = vmatpush3.bf16.msra.mxu0 %v326_v51 }
  0x1d   :  { %309 = vmatprep.subr.bf16.mxu0 %v327_v52 }
  0x20   :  { %310 = vmatpush3.bf16.msra.mxu0 %v327_v52 }
  0x21   :  { %311 = vmatprep.subr.bf16.mxu0 %v328_v53 }
  0x24   :  { %312 = vmatpush3.bf16.msra.mxu0 %v328_v53 }
  0x79   :  { %v70_v54 = vpop.permute.xlu1 %69 }
  0x7d   :  { %v55_v55 = vpop.permute.xlu0 %54  ;;  %v72_v56 = vpop.permute.xlu1 %71 }
  0x7e   :  { %v98_v58 = vsel %vm96_vm3, %v389_v3, %v55_v55  ;;  %v227_v3 = vld [vmem:[%s455_s3 + $0x8] sm:$0xff]  ;;  %s354_s3 = smov [#allocation2]  }
  0x7f   :  { %v103_v63 = vsel %vm101_vm4, %v98_v58, %v70_v54  ;;  %s270_s24 = sshll.u32 %s354_s3, 4  ;;  %s271_s24 = int_to_ptr.vmem [resolvable:$true] %s270_s24 }
  0x80   :  { %s329_s25 = scalar_lea.vmem %s271_s24, 32  ;;  %p334_p1 = scmp.lt.s32.totalorder %s271_s24, %s271_s24 }
  0x81   :  { %v57_v57 = vpop.permute.xlu0 %56  ;;  %v95_v60 = vpop.permute.xlu1 %94  ;;  %p330_p0 = scmp.ne.s32.totalorder %s271_s24, %s329_s25  ;;  %p335_p2 = scmp.lt.s32.totalorder %s329_s25, %s329_s25 }
  0x82   :  { %v100_v59 = vsel %vm96_vm3, %v400_v8, %v57_v57 }
  0x83   :  { %v105_v61 = vsel %vm101_vm4, %v100_v59, %v72_v56  ;;  %p336_p3 = por %p335_p2, %p334_p1 }
  0x84   :  { %v111_v1 = vsel %vm106_vm5, %v105_v61, %v95_v60 }
  0x85   :  { %v93_v62 = vpop.permute.xlu0 %92  ;;  %p337_p4 = pnand %p336_p3, %p330_p0 }
  0x86   :  { %v108_v0 = vsel %vm106_vm5, %v103_v63, %v93_v62 }
  0x87   :  { %313 = vmatprep.mubr.bf16.mxu0 %v108_v0 }
  0x88   :  { %314 = vmatmul.mubr.bf16.vlgmr.msra.gmra.mxu0 %v111_v1 }
 0x148   :  { %v315_v2 = vpop.f32.mrf.mxu0 }
 0x149   :  { %v230_v7 = vadd.f32 %v315_v2, %v226_v4 }
 0x14a   :  { %v211_v5 = vpop.f32.mrf.mxu0 }
 0x14b   :  { %v228_v10 = vadd.f32 %v226_v4, %v211_v5 }
 0x14c   :  { %v316_v6 = vpop.f32.mrf.mxu0 }
 0x14d   :  { %v231_v8 = vadd.f32 %v316_v6, %v227_v3 }
 0x14e   :  { %v214_v9 = vpop.f32.mrf.mxu0 }
 0x14f   :  { %v239_v11 = vmax.f32 %v230_v7, %v231_v8  ;;  %v229_v12 = vadd.f32 %v227_v3, %v214_v9 }
 0x151   :  { %v240_v13 = vrot.slane %v239_v11, 4  ;;  %v232_v14 = vmax.f32 %v228_v10, %v229_v12 }
 0x153   :  { %v241_v15 = vmax.f32 %v239_v11, %v240_v13  ;;  %v233_v16 = vrot.slane %v232_v14, 4 }
 0x155   :  { %v242_v17 = vrot.slane %v241_v15, 2  ;;  %v234_v18 = vmax.f32 %v232_v14, %v233_v16 }
 0x157   :  { %v243_v19 = vmax.f32 %v241_v15, %v242_v17  ;;  %v235_v20 = vrot.slane %v234_v18, 2 }
 0x159   :  { %v244_v21 = vrot.slane %v243_v19, 1  ;;  %v236_v22 = vmax.f32 %v234_v18, %v235_v20 }
 0x15b   :  { %v245_v24 = vmax.f32 %v243_v19, %v244_v21  ;;  %v237_v25 = vrot.slane %v236_v22, 1 }
 0x15d   :  { %v238_v26 = vmax.f32 %v236_v22, %v237_v25  ;;  %v254_v27 = vadd.f32 %v286_v23, %v245_v24 }
 0x15f   :  { %v253_v28 = vadd.f32 %v286_v23, %v238_v26  ;;  %v256_v29 = vmax.f32 %v254_v27, 0.0 }
 0x161   :  { %v255_v30 = vmax.f32 %v253_v28, 0.0  ;;  %v259_v31 = vrot.slane %v256_v29, 7 }
 0x163   :  { %v261_v32 = vsel %vm260_vm6, %v259_v31, %v255_v30 }
 0x164   :  { %263 = vst [vmem:[#allocation2] sm:$0x3] %v261_v32 }
 0x165   :  { %340 = shalt.err (!%p337_p4)
}
 0x166   :  { %273 = dma.vmem_to_hbm [thread:$0]  %s271_s24, 32, %s456_s4, [#allocation3]  }
 0x167   :  { %349 = dma.done.wait [#allocation3], 32  }
 0x168   :  { %350 = vsyncadd [#allocation3], 4294967264 }
 0x169   :  { %277 = vsyncpa [#allocation3], 1 }

</bundles_post_ra>
